<compile_context>
chip_gen: v5e
topology: v5e:2x2
jax: 0.10.0
libtpu: 0.0.40
codegen_flags: <defaults>
</compile_context>

<pallas_src>
import functools

import jax
import jax.numpy as jnp
from jax.experimental import pallas as pl
from jax.experimental.pallas import tpu as pltpu


def _simam_kernel(x_ref, o_ref, *, hw, inv_n_minus_1, e_lambda):
    # x_ref: (tile_rows, hw_padded) block in VMEM; each row = one (b, c) map,
    # zero-padded along lanes.  Statistics use the *real* hw.
    x = x_ref[...].astype(jnp.float32)

    # Decoupled row statistics (single pass over the loaded tile):
    #   mu = sum(x) / hw
    #   s  = sum((x - mu)^2) = sum(x*x) - hw * mu^2
    sum_x = jnp.sum(x, axis=-1, keepdims=True)
    sum_x2 = jnp.sum(x * x, axis=-1, keepdims=True)
    mu = sum_x * (1.0 / hw)
    s = jnp.maximum(sum_x2 - hw * (mu * mu), 0.0)  # clamp fp cancellation

    # denom >= 4*e_lambda > 0, so the approximate EUP reciprocal is safe.
    denom = 4.0 * (s * inv_n_minus_1 + e_lambda)
    inv_denom = pl.reciprocal(denom, approx=True)

    d = x - mu
    y = (d * d) * inv_denom + 0.5
    attn = jax.nn.sigmoid(y)
    o_ref[...] = (x * attn).astype(o_ref.dtype)


def _pick_tile_rows(rows, hw_padded, itemsize, vmem_bytes):
    """Choose a row-tile size targeting multi-MiB blocks within VMEM budget."""
    # Per-row VMEM footprint: double-buffered input + output blocks plus
    # ~4 full-tile f32 temporaries inside the kernel.
    per_row = hw_padded * (4 * itemsize + 4 * 4)
    cap = max(8, (vmem_bytes // 2) // per_row)            # stay under ~half VMEM
    target = max(8, (4 * 1024 * 1024) // (hw_padded * itemsize))  # ~4 MiB blocks
    tr = min(cap, target, max(rows, 8))
    tr = max(8, (tr // 8) * 8)                            # sublane multiple
    return int(tr)


def simam(x, e_lambda=1e-4, tile_rows=None):
    """SimAM forward. x: (b, c, h, w); output keeps x.dtype."""
    b, c, h, w = x.shape
    hw = h * w
    rows = b * c
    itemsize = jnp.dtype(x.dtype).itemsize

    # hw == 1 degenerates to the same NaN the PyTorch reference produces
    # (n = 0, and the deviation sum is identically zero).
    inv_n_minus_1 = (1.0 / float(hw - 1)) if hw > 1 else float("inf")

    # Lane-dense layout: pad H*W up to a multiple of 128.
    hw_padded = ((hw + 127) // 128) * 128

    # Chip VMEM budget (fallback = v7x's 64 MiB, the smallest).
    vmem_bytes = 64 * 1024 * 1024
    try:
        vmem_bytes = int(pltpu.get_tpu_info().vmem_capacity_bytes)
    except Exception:
        pass

    if tile_rows is None:
        tile_rows = _pick_tile_rows(rows, hw_padded, itemsize, vmem_bytes)
    tile_rows = max(8, min(int(tile_rows), ((rows + 7) // 8) * 8))
    tile_rows = max(8, (tile_rows // 8) * 8)

    grid_n = pl.cdiv(rows, tile_rows)
    # Prefer >= 2 grid steps so v7x's two TensorCores both get work
    # (the "parallel" axis shards across cores); no-op on 1-TC chips.
    if grid_n == 1 and tile_rows >= 16 and rows > 8:
        tile_rows = max(8, ((tile_rows // 2) // 8) * 8)
        grid_n = pl.cdiv(rows, tile_rows)
    rows_padded = grid_n * tile_rows

    x2d = x.reshape(rows, hw)
    if rows_padded != rows or hw_padded != hw:
        x2d = jnp.pad(x2d, ((0, rows_padded - rows), (0, hw_padded - hw)))

    kernel = functools.partial(
        _simam_kernel,
        hw=float(hw),
        inv_n_minus_1=inv_n_minus_1,
        e_lambda=float(e_lambda),
    )

    # Explicit scoped-VMEM budget: double-buffered in/out blocks + f32 temps.
    block_in = tile_rows * hw_padded * itemsize
    block_f32 = tile_rows * hw_padded * 4
    vmem_limit = int(min(0.9 * vmem_bytes,
                         max(32 * 1024 * 1024, 4 * block_in + 4 * block_f32)))

    cost = pl.CostEstimate(
        flops=10 * rows_padded * hw_padded,
        transcendentals=2 * rows_padded * hw_padded,
        bytes_accessed=2 * rows_padded * hw_padded * itemsize,
    )

    out2d = pl.pallas_call(
        kernel,
        out_shape=jax.ShapeDtypeStruct((rows_padded, hw_padded), x.dtype),
        grid_spec=pltpu.PrefetchScalarGridSpec(
            num_scalar_prefetch=0,
            grid=(grid_n,),
            in_specs=[pl.BlockSpec((tile_rows, hw_padded), lambda i: (i, 0))],
            out_specs=pl.BlockSpec((tile_rows, hw_padded), lambda i: (i, 0)),
        ),
        compiler_params=pltpu.CompilerParams(
            dimension_semantics=("parallel",),
            vmem_limit_bytes=vmem_limit,
        ),
        cost_estimate=cost,
    )(x2d)

    out2d = out2d[:rows, :hw]
    return out2d.reshape(b, c, h, w)


def simam_ref(x, e_lambda=1e-4):
    """Pure-JAX reference mirroring the PyTorch module (f32 math)."""
    x = x.astype(jnp.float32)
    b, c, h, w = x.shape
    n = w * h - 1
    mu = jnp.mean(x, axis=(2, 3), keepdims=True)
    d = (x - mu) ** 2
    y = d / (4.0 * (jnp.sum(d, axis=(2, 3), keepdims=True) / n + e_lambda)) + 0.5
    return x * jax.nn.sigmoid(y)


if __name__ == "__main__":
    key = jax.random.PRNGKey(0)

    # Primary test: aligned shapes (hw = 256 is already a multiple of 128).
    x = jax.random.normal(key, (2, 4, 16, 16), dtype=jnp.float32)
    out = jax.block_until_ready(simam(x))
    ref = simam_ref(x)
    assert out.shape == ref.shape
    # approx=True reciprocal introduces a tiny relative error; 3e-3 still
    # catches any semantic mistake (mean/denominator/sigmoid/+0.5).
    assert jnp.max(jnp.abs(out - ref)) < 3e-3, "f32 aligned mismatch"

    # Unaligned shapes: rows = 6 (not a multiple of 8), hw = 196 (padded to 256).
    x2 = jax.random.normal(jax.random.fold_in(key, 1), (2, 3, 14, 14),
                           dtype=jnp.float32)
    out2 = jax.block_until_ready(simam(x2))
    ref2 = simam_ref(x2)
    assert out2.shape == ref2.shape
    assert jnp.max(jnp.abs(out2 - ref2)) < 3e-3, "f32 unaligned mismatch"

    # bf16 I/O path: memory-bound kernel, I/O stays bf16, math is f32 inside.
    x3 = x.astype(jnp.bfloat16)
    out3 = jax.block_until_ready(simam(x3))
    assert out3.dtype == jnp.bfloat16
    ref3 = simam_ref(x3.astype(jnp.float32))
    assert jnp.max(jnp.abs(out3.astype(jnp.float32) - ref3)) < 3e-2, "bf16 mismatch"

    print("KERNEL_OK")
</pallas_src>

<mosaic_0001>
module attributes {stable_mosaic.version = 11 : i64} {
  func.func @_simam_kernel(%arg0: i32, %arg1: memref<8x256xf32, #tpu.memory_space<vmem>>, %arg2: memref<8x256xf32, #tpu.memory_space<vmem>>) attributes {dimension_semantics = [#tpu.dimension_semantics<parallel>], iteration_bounds = array<i64: 1>, scalar_prefetch = 0 : i64, scratch_operands = 0 : i64, tpu.core_type = #tpu.core_type<tc>, window_params = [{transform_indices = @transform_0, window_bounds = array<i64: 8, 256>}, {transform_indices = @transform_1, window_bounds = array<i64: 8, 256>}]} {
    %c0 = arith.constant 0 : index
    %c0_0 = arith.constant 0 : index
    %0 = vector.load %arg1[%c0, %c0_0] : memref<8x256xf32, #tpu.memory_space<vmem>>, vector<8x256xf32>
    %cst = arith.constant dense<0.000000e+00> : vector<8xf32>
    %1 = vector.multi_reduction <add>, %0, %cst [1] : vector<8x256xf32> to vector<8xf32>
    %2 = vector.shape_cast %1 : vector<8xf32> to vector<8x1xf32>
    %3 = arith.mulf %0, %0 : vector<8x256xf32>
    %cst_1 = arith.constant dense<0.000000e+00> : vector<8xf32>
    %4 = vector.multi_reduction <add>, %3, %cst_1 [1] : vector<8x256xf32> to vector<8xf32>
    %5 = vector.shape_cast %4 : vector<8xf32> to vector<8x1xf32>
    %cst_2 = arith.constant 3.906250e-03 : f32
    %6 = vector.broadcast %cst_2 : f32 to vector<8x1xf32>
    %7 = arith.mulf %2, %6 : vector<8x1xf32>
    %8 = arith.mulf %7, %7 : vector<8x1xf32>
    %cst_3 = arith.constant 2.560000e+02 : f32
    %9 = vector.broadcast %cst_3 : f32 to vector<8x1xf32>
    %10 = arith.mulf %9, %8 : vector<8x1xf32>
    %11 = arith.subf %5, %10 : vector<8x1xf32>
    %cst_4 = arith.constant 0.000000e+00 : f32
    %12 = vector.broadcast %cst_4 : f32 to vector<8x1xf32>
    %13 = arith.maximumf %11, %12 : vector<8x1xf32>
    %cst_5 = arith.constant 0.00392156886 : f32
    %14 = vector.broadcast %cst_5 : f32 to vector<8x1xf32>
    %15 = arith.mulf %13, %14 : vector<8x1xf32>
    %cst_6 = arith.constant 9.99999974E-5 : f32
    %16 = vector.broadcast %cst_6 : f32 to vector<8x1xf32>
    %17 = arith.addf %15, %16 : vector<8x1xf32>
    %cst_7 = arith.constant 4.000000e+00 : f32
    %18 = vector.broadcast %cst_7 : f32 to vector<8x1xf32>
    %19 = arith.mulf %18, %17 : vector<8x1xf32>
    %20 = tpu.reciprocal %19 {approx = true} : vector<8x1xf32> -> vector<8x1xf32>
    %21 = vector.broadcast %7 : vector<8x1xf32> to vector<8x256xf32>
    %22 = arith.subf %0, %21 : vector<8x256xf32>
    %23 = arith.mulf %22, %22 : vector<8x256xf32>
    %24 = vector.broadcast %20 : vector<8x1xf32> to vector<8x256xf32>
    %25 = arith.mulf %23, %24 : vector<8x256xf32>
    %cst_8 = arith.constant 5.000000e-01 : f32
    %26 = vector.broadcast %cst_8 : f32 to vector<8x256xf32>
    %27 = arith.addf %25, %26 : vector<8x256xf32>
    %28 = arith.negf %27 : vector<8x256xf32>
    %29 = math.exp %28 : vector<8x256xf32>
    %cst_9 = arith.constant 1.000000e+00 : f32
    %30 = vector.broadcast %cst_9 : f32 to vector<8x256xf32>
    %31 = arith.addf %30, %29 : vector<8x256xf32>
    %32 = arith.divf %30, %31 : vector<8x256xf32>
    %33 = arith.mulf %0, %32 : vector<8x256xf32>
    %c0_10 = arith.constant 0 : index
    %c0_11 = arith.constant 0 : index
    %34 = vector.load %arg2[%c0_10, %c0_11] : memref<8x256xf32, #tpu.memory_space<vmem>>, vector<8x256xf32>
    tpu.vector_store %arg2[%c0_10, %c0_11], %33 {strides = array<i32>} : memref<8x256xf32, #tpu.memory_space<vmem>>, vector<8x256xf32>,
    return
  }
  func.func @transform_0(%arg0: i32) -> (i32, i32) {
    %c0_i32 = arith.constant 0 : i32
    %c0_i32_0 = arith.constant 0 : i32
    return %arg0, %c0_i32 : i32, i32
  }
  func.func @transform_1(%arg0: i32) -> (i32, i32) {
    %c0_i32 = arith.constant 0 : i32
    %c0_i32_0 = arith.constant 0 : i32
    return %arg0, %c0_i32 : i32, i32
  }
}

</mosaic_0001>

<bundles_post_ra>
// kernel: tpu_custom_call.1
= control target key start
LH: loop header
LB: loop body
LE: loop exit
PB: predicated region body
PF: predicated region fallthrough
CT: control target
= control target key end

     0   :  { %6 = vsyncpa [#allocation3], 0  ;;  %s207_s0 = inlined_call_operand.hbm [shape: f32[8,256], index: 0, kind: input, shape index: {}]   ;;  %s208_s1 = inlined_call_operand.hbm [shape: f32[8,256], index: 1, kind: output, shape index: {}]  }
   0x1   :  { %7 = vsyncpa [#allocation4], 0  ;;  %s13_s8 = sshll.u32 %s207_s0, 4  ;;  %s175_s9 = smov [#allocation2]   ;;  %s14_s8 = int_to_ptr.hbm [resolvable:$true] %s13_s8 }
   0x2   :  { %s15_s10 = sshll.u32 %s175_s9, 4  ;;  %s16_s10 = int_to_ptr.vmem [resolvable:$true] %s15_s10 }
   0x3   :  { %18 = dma.hbm_to_vmem [thread:$0]  %s14_s8, 256, %s16_s10, [#allocation3]  }
   0x4   :  { %171 = dma.done.wait [#allocation3], 256  }
   0x5   :  { %172 = vsyncadd [#allocation3], 4294967040  ;;  %v190_v0 = vld [vmem:[#allocation2] sm:$0xff]  ;;  %v192_v1 = vld [vmem:[#allocation2 + $0x8] sm:$0xff]  ;;  %s176_s0 = smov [#allocation5]   ;;  %s99_s14 = sshll.u32 %s208_s1, 4  ;;  %s100_s14 = int_to_ptr.hbm [resolvable:$true] %s99_s14 }
   0x6   :  { %v25_v2 = vadd.f32 %v192_v1, %v190_v0  ;;  %v28_v3 = vmul.f32 %v190_v0, %v190_v0  ;;  %v29_v4 = vmul.f32 %v192_v1, %v192_v1  ;;  %s97_s11 = sshll.u32 %s176_s0, 4  ;;  %s98_s11 = int_to_ptr.vmem [resolvable:$true] %s97_s11 }
   0x8   :  { %26 = vadd.xlane.f32.xlu0 %v25_v2  ;;  %v30_v5 = vadd.f32 %v29_v4, %v28_v3 }
  0x10   :  { %31 = vadd.xlane.f32.xlu0 %v30_v5 }
  0x7b   :  { %v27_v6 = vpop.xlane.xlu0 %26 }
  0x7c   :  { %v33_v7 = vmul.f32 0.00390625, %v27_v6 }
  0x7e   :  { %v34_v8 = vmul.f32 %v33_v7, %v33_v7  ;;  %v42_v16 = vsub.f32 %v190_v0, %v33_v7  ;;  %v43_v17 = vsub.f32 %v192_v1, %v33_v7 }
  0x80   :  { %v35_v9 = vmul.f32 256.0, %v34_v8  ;;  %v44_v18 = vmul.f32 %v42_v16, %v42_v16  ;;  %v45_v19 = vmul.f32 %v43_v17, %v43_v17 }
  0x83   :  { %v32_v10 = vpop.xlane.xlu0 %31 }
  0x84   :  { %v36_v11 = vsub.f32 %v32_v10, %v35_v9 }
  0x86   :  { %v37_v12 = vmax.f32 %v36_v11, 0.0 }
  0x88   :  { %v38_v13 = vmul.f32 0.003921569, %v37_v12 }
  0x8a   :  { %v39_v14 = vadd.f32 0.0001, %v38_v13 }
  0x8c   :  { %v40_v15 = vmul.f32 4.0, %v39_v14 }
  0x8e   :  { %113 = vrcp.f32 %v40_v15 }
  0x94   :  { %v114_v20 = vpop.eup %113 }
  0x95   :  { %v46_v21 = vmul.f32 %v114_v20, %v44_v18  ;;  %v47_v22 = vmul.f32 %v114_v20, %v45_v19 }
  0x97   :  { %v48_v23 = vadd.f32 0.5, %v46_v21  ;;  %v49_v24 = vadd.f32 0.5, %v47_v22 }
  0x99   :  { %v109_v25 = vmul.f32 -1.442695, %v48_v23  ;;  %v110_v26 = vmul.f32 -1.442695, %v49_v24 }
  0x9b   :  { %115 = vpow2.f32 %v109_v25 }
  0x9c   :  { %117 = vpow2.f32 %v110_v26 }
  0xa1   :  { %v116_v27 = vpop.eup %115 }
  0xa2   :  { %v118_v28 = vpop.eup %117  ;;  %v56_v29 = vadd.f32 1.0, %v116_v27 }
  0xa3   :  { %v57_v30 = vadd.f32 1.0, %v118_v28 }
  0xa4   :  { %119 = vrcp.f32 %v56_v29  ;;  %v69_v36 = vand.u32 2147483648, %v56_v29  ;;  %v67_v39 = vand.u32 2147483647, %v56_v29  ;;  %vm63_vm2 = vweird.f32 %v56_v29 }
  0xa5   :  { %121 = vrcp.f32 %v57_v30  ;;  %v84_v40 = vand.u32 2147483648, %v57_v30  ;;  %v82_v42 = vand.u32 2147483647, %v57_v30  ;;  %vm78_vm4 = vweird.f32 %v57_v30 }
  0xa6   :  { %v70_v44 = vor.u32 1.1754944e-38, %v69_v36  ;;  %vm68_vm5 = vcmp.eq.f32.partialorder %v67_v39, 8.507059e+37 }
  0xa7   :  { %v85_v47 = vor.u32 1.1754944e-38, %v84_v40  ;;  %vm83_vm7 = vcmp.eq.f32.partialorder %v82_v42, 8.507059e+37 }
  0xaa   :  { %v120_v31 = vpop.eup %119 }
  0xab   :  { %v122_v32 = vpop.eup %121  ;;  %v59_v33 = vmul.f32 %v120_v31, %v56_v29  ;;  %vm64_vm0 = vweird.f32 %v120_v31 }
  0xac   :  { %v74_v34 = vmul.f32 %v122_v32, %v57_v30  ;;  %vm79_vm1 = vweird.f32 %v122_v32  ;;  %vm65_vm3 = vmor %vm63_vm2, %vm64_vm0 }
  0xad   :  { %v60_v35 = vsub.f32 1.0, %v59_v33  ;;  %vm80_vm6 = vmor %vm78_vm4, %vm79_vm1 }
  0xae   :  { %v75_v37 = vsub.f32 1.0, %v74_v34 }
  0xaf   :  { %v61_v38 = vmul.f32 %v120_v31, %v60_v35 }
  0xb0   :  { %v76_v41 = vmul.f32 %v122_v32, %v75_v37 }
  0xb1   :  { %v62_v43 = vadd.f32 %v120_v31, %v61_v38 }
  0xb2   :  { %v77_v45 = vadd.f32 %v122_v32, %v76_v41 }
  0xb3   :  { %v66_v46 = vsel %vm65_vm3, %v120_v31, %v62_v43 }
  0xb4   :  { %v71_v48 = vsel %vm68_vm5, %v70_v44, %v66_v46  ;;  %v81_v49 = vsel %vm80_vm6, %v122_v32, %v77_v45 }
  0xb5   :  { %v86_v50 = vsel %vm83_vm7, %v85_v47, %v81_v49  ;;  %v88_v51 = vmul.f32 %v71_v48, %v190_v0 }
  0xb6   :  { %v89_v52 = vmul.f32 %v86_v50, %v192_v1 }
  0xb7   :  { %90 = vst [vmem:[#allocation5] sm:$0xff] %v88_v51 }
  0xb8   :  { %91 = vst [vmem:[#allocation5 + $0x8] sm:$0xff] %v89_v52 }
  0xb9   :  { %102 = dma.vmem_to_hbm [thread:$0]  %s98_s11, 256, %s100_s14, [#allocation4]  }
  0xba   :  { %173 = dma.done.wait [#allocation4], 256  }
  0xbb   :  { %174 = vsyncadd [#allocation4], 4294967040 }
  0xbc   :  { %107 = vsyncpa [#allocation3], 1 }
  0xbd   :  { %108 = vsyncpa [#allocation4], 1 }

</bundles_post_ra>
